<compile_context>
chip_gen: v7x
topology: tpu7x:2x2x1
jax: 0.10.0
libtpu: 0.0.40
codegen_flags: <defaults>
</compile_context>

<pallas_src>
import jax
import jax.numpy as jnp
from jax.experimental import pallas as pl
from jax.experimental.pallas import tpu as pltpu


def _pick_tile(total, max_tile, align, min_tiles=1):
    """Largest multiple of `align` <= max_tile that divides `total`, preferring at
    least `min_tiles` tiles.  Falls back to an aligned non-divisor (masked last
    tile) only when no aligned divisor exists."""
    total = int(total)
    max_tile = int(max_tile)
    if total <= align:
        return total                       # small dim -> single exact (full-dim) block
    hi = min(max_tile, total)
    if min_tiles > 1:
        hi = min(hi, max(align, total // min_tiles))
    hi = max(align, (hi // align) * align)
    for t in range(hi, align - 1, -align):
        if total % t == 0:
            return t
    return hi                              # no aligned divisor; last tile is masked


def _adversary_kernel(q_ref, w_ref, mem_ref, logit_ref, inv_ref):
    # q_ref:     (TN, C)  VMEM, current N tile of the queries (storage dtype)
    # w_ref:     (C, TK)  VMEM, current K tile of the memory bank weights (storage dtype)
    # mem_ref:   (C, TK)  VMEM out, normalized memory bank tile (revisited across N steps)
    # logit_ref: (TN, TK) VMEM out, logits for this (N, K) tile
    # inv_ref:   (1, TK)  VMEM scratch, per-column inverse norms cached across N steps
    n_idx = pl.program_id(1)

    # MXU starts as soon as the raw W tile lands -- no dependence on the normalization
    # chain (XLU reduce + EUP rsqrt + VPU rescale), which overlaps the MXU drain below.
    raw = jnp.dot(q_ref[...], w_ref[...], preferred_element_type=jnp.float32)

    @pl.when(n_idx == 0)
    def _():
        # F.normalize(W, dim=0): col / max(||col||_2, 1e-12)
        #   == col * rsqrt(max(||col||^2, 1e-24))   (rsqrt -> EUP slot)
        # sumsq accumulated in f32 even if the bank is stored in bf16.
        w32 = w_ref[...].astype(jnp.float32)
        sumsq = jnp.sum(w32 * w32, axis=0, keepdims=True)
        inv = jax.lax.rsqrt(jnp.maximum(sumsq, 1e-24))
        inv_ref[...] = inv
        mem_ref[...] = (w32 * inv).astype(mem_ref.dtype)

    # Column scaling commutes with the matmul: post-scale the accumulator.
    logit_ref[...] = (raw * inv_ref[...]).astype(logit_ref.dtype)


def _adversary_forward_single(q, W, *, tile_k=2048, tile_n=256):
    """q: (N, C), W: (C, K) -> (memory_bank (C, K), logit (N, K))."""
    N, C = q.shape
    C2, K = W.shape
    assert C == C2, "feature dim mismatch"

    # >= ~4 K tiles when the bank allows it (pipelining + megacore sharding), exact
    # 128-multiple divisor of K when possible (unmasked lane-dense stores), capped at
    # tile_k=2048 so the double-buffered working set fits v7x's 32 MiB scoped VMEM.
    tk = _pick_tile(K, tile_k, 128, min_tiles=4)
    tn = _pick_tile(N, tile_n, 8, min_tiles=1)
    grid = (pl.cdiv(K, tk), pl.cdiv(N, tn))

    w_bytes = W.size * W.dtype.itemsize
    q_bytes = q.size * q.dtype.itemsize
    logit_bytes = N * K * q.dtype.itemsize
    cost = pl.CostEstimate(
        flops=2 * N * C * K,
        transcendentals=K,                             # one rsqrt per bank column
        bytes_accessed=2 * w_bytes + q_bytes + logit_bytes,
    )

    mem_bank, logit = pl.pallas_call(
        _adversary_kernel,
        out_shape=(
            jax.ShapeDtypeStruct((C, K), W.dtype),
            jax.ShapeDtypeStruct((N, K), q.dtype),
        ),
        grid=grid,
        in_specs=[
            pl.BlockSpec((tn, C), lambda k, n: (n, 0)),     # q tile (tiny re-read per K)
            pl.BlockSpec((C, tk), lambda k, n: (0, k)),     # W tile, resident across N
        ],
        out_specs=(
            pl.BlockSpec((C, tk), lambda k, n: (0, k)),     # normalized bank tile
            pl.BlockSpec((tn, tk), lambda k, n: (n, k)),    # logit tile
        ),
        scratch_shapes=[pltpu.VMEM((1, tk), jnp.float32)],  # cached inverse column norms
        compiler_params=pltpu.CompilerParams(
            # K tiles are independent -> megacore-shard on v7x; N revisits the mem/inv
            # buffers and must stay in order.
            dimension_semantics=("parallel", "arbitrary"),
        ),
        cost_estimate=cost,
    )(q, W)
    return mem_bank, logit


class AdversaryNegatives:
    """JAX/Pallas port of Adversary_Negatives (forward path only)."""

    def __init__(self, bank_size, dim, multi_crop=0, key=None, tile_k=2048, tile_n=256):
        self.multi_crop = multi_crop
        self.tile_k = tile_k
        self.tile_n = tile_n
        if key is None:
            key = jax.random.PRNGKey(0)
        # Deterministic init matching torch.randn(dim, bank_size) / zeros.
        self.W = jax.random.normal(key, (dim, bank_size), dtype=jnp.float32)
        self.v = jnp.zeros((dim, bank_size), dtype=jnp.float32)
        # TODO(synk): update()/print_weight() are optimizer-side buffer ops, not part of forward.

    def forward(self, q, init_mem=False):
        if self.multi_crop and (not init_mem):
            # Fuse all crops into a single call: W is read + normalized + written back
            # exactly once regardless of the number of crops.
            sizes = [qi.shape[0] for qi in q]
            q_all = jnp.concatenate(list(q), axis=0)
            mem_bank, logit_all = _adversary_forward_single(
                q_all, self.W, tile_k=self.tile_k, tile_n=self.tile_n
            )
            # TODO(synk): downstream losses could index the fused (N_total, K) logit via
            # offsets to avoid these per-crop slice copies (one extra HBM pass each).
            logit_list = []
            off = 0
            for n in sizes:
                logit_list.append(logit_all[off:off + n])
                off += n
            return mem_bank, self.W, logit_list
        else:
            mem_bank, logit = _adversary_forward_single(
                q, self.W, tile_k=self.tile_k, tile_n=self.tile_n
            )
            return mem_bank, self.W, logit


if __name__ == "__main__":
    # Small shapes consistent with the module: dim (C) = 32, bank_size (K) = 512, batch N = 8.
    # The default heuristic picks tk=128 here -> 4 K tiles, so the tiled path is exercised.
    N, C, K = 8, 32, 512
    key = jax.random.PRNGKey(0)
    kq, kw, kq2 = jax.random.split(key, 3)

    module = AdversaryNegatives(bank_size=K, dim=C, multi_crop=0, key=kw)
    q = jax.random.normal(kq, (N, C), dtype=jnp.float32)

    mem_bank, W_out, logit = module.forward(q)
    jax.block_until_ready((mem_bank, W_out, logit))

    # Reference in plain JAX (torch.nn.functional.normalize semantics, eps=1e-12).
    col_norm = jnp.maximum(
        jnp.sqrt(jnp.sum(module.W * module.W, axis=0, keepdims=True)), 1e-12
    )
    mem_ref = module.W / col_norm
    logit_ref = q @ mem_ref

    assert mem_bank.shape == (C, K)
    assert W_out.shape == (C, K)
    assert logit.shape == (N, K)
    assert jnp.allclose(mem_bank, mem_ref, atol=1e-5, rtol=1e-5)
    assert jnp.allclose(logit, logit_ref, atol=1e-4, rtol=1e-4)
    assert jnp.allclose(W_out, module.W)

    # Multi-crop path: two crops of different batch sizes fused into one pallas_call.
    # tile_n=16 forces multiple N tiles (grid_n > 1) so the inv-norm scratch reuse and
    # the revisited mem_bank block are actually exercised.
    module_mc = AdversaryNegatives(bank_size=K, dim=C, multi_crop=1, key=kw, tile_n=16)
    q_crops = [
        jax.random.normal(kq, (8, C), dtype=jnp.float32),
        jax.random.normal(kq2, (16, C), dtype=jnp.float32),
    ]
    mem_mc, W_mc, logit_list = module_mc.forward(q_crops)
    jax.block_until_ready((mem_mc, W_mc, logit_list))

    assert len(logit_list) == 2
    assert jnp.allclose(mem_mc, mem_ref, atol=1e-5, rtol=1e-5)
    for qi, li in zip(q_crops, logit_list):
        assert li.shape == (qi.shape[0], K)
        assert jnp.allclose(li, qi @ mem_ref, atol=1e-4, rtol=1e-4)

    print("KERNEL_OK")
</pallas_src>

<mosaic_0001>
module attributes {stable_mosaic.version = 11 : i64} {
  func.func @_adversary_kernel(%arg0: i32, %arg1: i32, %arg2: memref<8x32xf32, #tpu.memory_space<vmem>>, %arg3: memref<32x128xf32, #tpu.memory_space<vmem>>, %arg4: memref<32x128xf32, #tpu.memory_space<vmem>>, %arg5: memref<8x128xf32, #tpu.memory_space<vmem>>, %arg6: memref<1x128xf32, #tpu.memory_space<vmem>>) attributes {dimension_semantics = [#tpu.dimension_semantics<parallel>, #tpu.dimension_semantics<arbitrary>], iteration_bounds = array<i64: 4, 1>, scalar_prefetch = 0 : i64, scratch_operands = 1 : i64, tpu.core_type = #tpu.core_type<tc>, window_params = [{transform_indices = @transform_0, window_bounds = array<i64: 8, 32>}, {transform_indices = @transform_1, window_bounds = array<i64: 32, 128>}, {transform_indices = @transform_2, window_bounds = array<i64: 32, 128>}, {transform_indices = @transform_3, window_bounds = array<i64: 8, 128>}]} {
    %c0 = arith.constant 0 : index
    %c0_0 = arith.constant 0 : index
    %0 = vector.load %arg2[%c0, %c0_0] : memref<8x32xf32, #tpu.memory_space<vmem>>, vector<8x32xf32>
    %c0_1 = arith.constant 0 : index
    %c0_2 = arith.constant 0 : index
    %1 = vector.load %arg3[%c0_1, %c0_2] : memref<32x128xf32, #tpu.memory_space<vmem>>, vector<32x128xf32>
    %cst = arith.constant dense<0.000000e+00> : vector<8x128xf32>
    %2 = tpu.matmul %0, %1, %cst {dimension_numbers = #tpu.dot_dimension_numbers<[1], [0], [0], [1], [0, 0, 1, 1], [], []>} : vector<8x32xf32>, vector<32x128xf32>, vector<8x128xf32> -> vector<8x128xf32>
    %c0_i32 = arith.constant 0 : i32
    %3 = arith.cmpi eq, %arg1, %c0_i32 : i32
    %4 = arith.extui %3 : i1 to i32
    %c0_i32_3 = arith.constant 0 : i32
    %5 = arith.cmpi ne, %4, %c0_i32_3 : i32
    scf.if %5 {
      %c0_8 = arith.constant 0 : index
      %c0_9 = arith.constant 0 : index
      %10 = vector.load %arg3[%c0_8, %c0_9] : memref<32x128xf32, #tpu.memory_space<vmem>>, vector<32x128xf32>
      %11 = arith.mulf %10, %10 : vector<32x128xf32>
      %cst_10 = arith.constant dense<0.000000e+00> : vector<128xf32>
      %12 = vector.multi_reduction <add>, %11, %cst_10 [0] : vector<32x128xf32> to vector<128xf32>
      %13 = vector.shape_cast %12 : vector<128xf32> to vector<1x128xf32>
      %cst_11 = arith.constant 1.000000e-24 : f32
      %14 = vector.broadcast %cst_11 : f32 to vector<1x128xf32>
      %15 = arith.maximumf %13, %14 : vector<1x128xf32>
      %16 = math.rsqrt %15 : vector<1x128xf32>
      %c0_12 = arith.constant 0 : index
      %c0_13 = arith.constant 0 : index
      %17 = vector.load %arg6[%c0_12, %c0_13] : memref<1x128xf32, #tpu.memory_space<vmem>>, vector<1x128xf32>
      tpu.vector_store %arg6[%c0_12, %c0_13], %16 {strides = array<i32>} : memref<1x128xf32, #tpu.memory_space<vmem>>, vector<1x128xf32>,
      %18 = vector.broadcast %16 : vector<1x128xf32> to vector<32x128xf32>
      %19 = arith.mulf %10, %18 : vector<32x128xf32>
      %c0_14 = arith.constant 0 : index
      %c0_15 = arith.constant 0 : index
      %20 = vector.load %arg4[%c0_14, %c0_15] : memref<32x128xf32, #tpu.memory_space<vmem>>, vector<32x128xf32>
      tpu.vector_store %arg4[%c0_14, %c0_15], %19 {strides = array<i32>} : memref<32x128xf32, #tpu.memory_space<vmem>>, vector<32x128xf32>,
    } else {
    }
    %c0_4 = arith.constant 0 : index
    %c0_5 = arith.constant 0 : index
    %6 = vector.load %arg6[%c0_4, %c0_5] : memref<1x128xf32, #tpu.memory_space<vmem>>, vector<1x128xf32>
    %7 = vector.broadcast %6 : vector<1x128xf32> to vector<8x128xf32>
    %8 = arith.mulf %2, %7 : vector<8x128xf32>
    %c0_6 = arith.constant 0 : index
    %c0_7 = arith.constant 0 : index
    %9 = vector.load %arg5[%c0_6, %c0_7] : memref<8x128xf32, #tpu.memory_space<vmem>>, vector<8x128xf32>
    tpu.vector_store %arg5[%c0_6, %c0_7], %8 {strides = array<i32>} : memref<8x128xf32, #tpu.memory_space<vmem>>, vector<8x128xf32>,
    return
  }
  func.func @transform_0(%arg0: i32, %arg1: i32) -> (i32, i32) {
    %c0_i32 = arith.constant 0 : i32
    %c0_i32_0 = arith.constant 0 : i32
    return %arg1, %c0_i32 : i32, i32
  }
  func.func @transform_1(%arg0: i32, %arg1: i32) -> (i32, i32) {
    %c0_i32 = arith.constant 0 : i32
    %c0_i32_0 = arith.constant 0 : i32
    return %c0_i32, %arg0 : i32, i32
  }
  func.func @transform_2(%arg0: i32, %arg1: i32) -> (i32, i32) {
    %c0_i32 = arith.constant 0 : i32
    %c0_i32_0 = arith.constant 0 : i32
    return %c0_i32, %arg0 : i32, i32
  }
  func.func @transform_3(%arg0: i32, %arg1: i32) -> (i32, i32) {
    %c0_i32 = arith.constant 0 : i32
    return %arg1, %arg0 : i32, i32
  }
}

</mosaic_0001>

<bundles_post_ra>
// kernel: tpu_custom_call.1
= control target key start
LH: loop header
LB: loop body
LE: loop exit
PB: predicated region body
PF: predicated region fallthrough
CT: control target
= control target key end

     0   :  { %9 = vsyncpa [#allocation4], 0  ;;  %s1114_s0 = inlined_call_operand.hbm [shape: f32[8,32], index: 0, kind: input, shape index: {}]   ;;  %s1115_s1 = inlined_call_operand.hbm [shape: f32[32,512], index: 1, kind: input, shape index: {}]   ;;  %s1116_s2 = inlined_call_operand.hbm [shape: f32[32,512], index: 2, kind: output, shape index: {0}]   ;;  %s1117_s3 = inlined_call_operand.hbm [shape: f32[8,512], index: 3, kind: output, shape index: {1}]  }
   0x1   :  { %10 = vsyncpa [#allocation7], 0 }
   0x2   :  { %12 = vsyncpa [#allocation7 + $0x1], 0 }
   0x3   :  { %13 = vsyncpa [#allocation5], 0 }
   0x4   :  { %15 = vsyncpa [#allocation5 + $0x1], 0 }
   0x5   :  { %16 = vsyncpa [#allocation10], 0 }
   0x6   :  { %18 = vsyncpa [#allocation10 + $0x1], 0  ;;  %s857_s12 = smov 0   ;;  %s859_s13 = smov 0  }
   0x7   :  { %s861_s14 = smov 0   ;;  %s863_s15 = smov 0  }
   0x8   :  { %s865_s16 = smov 0   ;;  %s867_s17 = smov 0  }
   0x9 LB: > { %s515_s18 = sadd.s32 4294967295, %s822_s17   ;;  %s516_s19 = sadd.s32 4294967294, %s822_s17   ;;  %s822_s17 = sphi %s867_s17, %s24_s17   ;;  %s818_s16 = sphi %s865_s16, %s1144_s16   ;;  %s814_s15 = sphi %s863_s15, %s1143_s15   ;;  %s810_s14 = sphi %s861_s14, %s1142_s14   ;;  %s806_s13 = sphi %s859_s13, %s1141_s13   ;;  %s802_s12 = sphi %s857_s12, %s1140_s12  }
   0xa   : > { %s69_s20 = sadd.s32 1, %s810_s14  ;;  %p76_p0 = scmp.ne.s32.totalorder %s810_s14, %s806_s13 }
   0xb   : > { %p77_p1 = scmp.eq.s32.totalorder %s822_s17, 0  ;;  %p82_p2 = scmp.ne.s32.totalorder %s806_s13, %s802_s12 }
   0xc   : > { %p895_p3 = scmp.eq.s32.totalorder %s515_s18, 0  ;;  %p106_p4 = scmp.eq.s32.totalorder %s515_s18, 3 }
   0xd   : > { %p899_p5 = por %p77_p1, %p76_p0  ;;  %p112_p6 = scmp.eq.s32.totalorder %s516_s19, 3 }
   0xe   : > { %s1124_s21 = scalar_select %p895_p3, 1, 0 }
   0xf   : > { %p905_p7 = por %p895_p3, %p82_p2  ;;  %p909_p8 = por %p106_p4, %p76_p0 }
  0x10   : > { %p913_p9 = por %p112_p6, %p82_p2  ;;  %p517_p10 = scmp.ge.s32.totalorder %s822_s17, 1 }
  0x11   : > { %s1126_s23 = scalar_select %p905_p7, 1, 0 }
  0x12   : > { %s1127_s24 = scalar_select %p909_p8, 1, 0 }
  0x13   : > { %s1128_s25 = scalar_select %p913_p9, 1, 0 }
  0x14   : > { %p147_p11 = scmp.lt.s32.totalorder %s822_s17, 5  ;;  %s824_s27 = smov [#allocation3]  }
  0x15   : > { %s162_s28 = sshll.u32 %s824_s27, 4  ;;  %p583_p13 = scmp.lt.s32.totalorder %s822_s17, 4  ;;  %s163_s28 = int_to_ptr.vmem [resolvable:$true] %s162_s28 }
  0x16   : > { %p919_p12 = pnand %p517_p10, %p147_p11  ;;  %s36_s4 = sadd.s32 1, %s818_s16 }
  0x17   : > { %p928_p1 = pnand %p583_p13, %p899_p5  ;;  %p939_p4 = scmp.ge.s32.totalorder %s36_s4, 4 }
  0x18   : > { %s1129_s26 = scalar_select %p919_p12, 1, 0 }
  0x19   : > { %p567_p0 = pneg %p919_p12  ;;  %s173_s6 = sand.u32 1, %s810_s14  }
  0x1a   : > { %s1130_s29 = scalar_select %p928_p1, 1, 0 }
  0x1b   : > { %p934_p2 = pnand %p567_p0, %p895_p3  ;;  %s646_s9 = scalar_lea.hbm %s1114_s0, 128 }
  0x1c   : > { %s1132_s5 = scalar_select %p939_p4, 1, 0 }
  0x1d   : > { %p647_p5 = scmp.ne.s32.totalorder %s1114_s0, %s646_s9  ;;  %p648_p6 = pneg %p934_p2 }
  0x1e   : > { %p653_p13 = scmp.lt.u32.totalorder %s646_s9, %s1114_s0 }
  0x1f   : > { %p649_p10 = pnand %p648_p6, %p647_p5 }
  0x21   : > { %p650_p11 = pneg %p649_p10 }
  0x23   : > { %p655_p0 = pnand %p653_p13, %p650_p11 }
  0x25   : > { %658 = shalt.err (!%p655_p0)
}
  0x26   : > { %s659_s22 = scalar_lea.vmem %s163_s28, 128  ;;  %p667_p3 = scmp.lt.s32.totalorder %s163_s28, %s163_s28 }
  0x27   : > { %p660_p9 = scmp.ne.s32.totalorder %s163_s28, %s659_s22  ;;  %p668_p12 = scmp.lt.s32.totalorder %s659_s22, %s659_s22 }
  0x29   : > { %p662_p8 = pnand %p660_p9, %p648_p6  ;;  %p669_p1 = por %p668_p12, %p667_p3 }
  0x2b   : > { %p663_p7 = pneg %p662_p8 }
  0x2d   : > { %p670_p4 = pnand %p669_p1, %p663_p7 }
  0x2f   : > { %673 = shalt.err (!%p670_p4)
}
  0x30   : > { %570 = dma.hbm_to_vmem [thread:$0]  (!%p934_p2), %s1114_s0, 128, %s163_s28, [#allocation4]  }
  0x31   : > { %p1133_p9 = scmp.ne.s32.totalorder %s1132_s5, 0  ;;  %s520_s8 = sshll.u32 %s173_s6, 5 }
  0x32   : > { %s521_s10 = sshll.u32 %s818_s16, 7  ;;  %s177_s19 = scalar_lea.vmem [#allocation6], %s520_s8 }
  0x33   : > { %s1146_s4 = smov (%p1133_p9, %s36_s4), 0  ;;  %s970_s18 = scalar_lea.hbm %s1115_s1, %s521_s10 }
  0x34   : > { %s66_s9 = ssub.s32 %s818_s16, %s1146_s4  ;;  %s183_s22 = sshll.u32 %s177_s19, 4  ;;  %s977_s22 = int_to_ptr.vmem [resolvable:$true] %s183_s22 }
  0x35   : > { %p67_p3 = scmp.eq.s32.totalorder %s66_s9, 0  ;;  %s979_s5 = scalar_lea.sflag [#allocation7], %s173_s6 }
  0x36   : > { %s674_s27 = scalar_lea.hbm %s970_s18, 512  ;;  %p1134_p8 = scmp.ne.s32.totalorder %s1130_s29, 0 }
  0x37   : > { %s975_s28 = scalar_select %p67_p3, %s810_s14, %s69_s20  }
  0x38   : > { %p675_p7 = scmp.ne.s32.totalorder %s970_s18, %s674_s27  ;;  %p676_p12 = pneg %p1134_p8 }
  0x39   : > { %s679_s8 = scalar_lea.hbm %s1115_s1, 2048  ;;  %p680_p4 = scmp.lt.u32.totalorder %s970_s18, %s1115_s1 }
  0x3a   : > { %p677_p1 = pnand %p676_p12, %p675_p7  ;;  %p681_p5 = scmp.lt.u32.totalorder %s679_s8, %s674_s27 }
  0x3b   : > { %p683_p10 = scmp.lt.u32.totalorder %s674_s27, %s970_s18 }
  0x3c   : > { %p678_p2 = pneg %p677_p1  ;;  %p682_p6 = por %p681_p5, %p680_p4 }
  0x3e   : > { %p684_p11 = por %p683_p10, %p682_p6 }
  0x40   : > { %p685_p13 = pnand %p684_p11, %p678_p2 }
  0x42   : > { %688 = shalt.err (!%p685_p13)
}
  0x43   : > { %s689_s20 = scalar_lea.vmem %s977_s22, 512  ;;  %s825_s6 = smov [#allocation6]  }
  0x44   : > { %p690_p0 = scmp.ne.s32.totalorder %s977_s22, %s689_s20  ;;  %s694_s11 = sshll.u32 %s825_s6, 4  ;;  %s695_s11 = int_to_ptr.vmem [resolvable:$false] %s694_s11 }
  0x45   : > { %s696_s19 = scalar_lea.vmem %s695_s11, 1024  ;;  %p697_p7 = scmp.lt.s32.totalorder %s977_s22, %s695_s11 }
  0x46   : > { %p692_p9 = pnand %p690_p0, %p676_p12  ;;  %p698_p1 = scmp.lt.s32.totalorder %s696_s19, %s689_s20 }
  0x48   : > { %p693_p3 = pneg %p692_p9  ;;  %p699_p4 = por %p698_p1, %p697_p7 }
  0x4a   : > { %p700_p5 = pnand %p699_p4, %p693_p3 }
  0x4c   : > { %703 = shalt.err (!%p700_p5)
}
  0x4d   : > { %s826_s27 = smov 512   ;;  %s827_s7 = smov 128  }
  0x4e   : > { %s828_s9 = smov 8   ;;  %p1135_p12 = scmp.ne.s32.totalorder %s1129_s26, 0 }
  0x4f   : > { %574 = dma.hbm_to_vmem [thread:$0]  (!%p1134_p8), %s970_s18, 512, %s977_s22, %s979_s5, %s826_s27, %s827_s7, %s828_s9  }
  0x50   : > { %195 = sbr.rel (%p1135_p12) target bundleno = 330 (0x14a), region = 28  ;;  %p1136_p2 = scmp.ne.s32.totalorder (!%p1135_p12), %s1124_s21, 0 }
  0x57   : > { %785 = dma.done.wait (%p1136_p2), [#allocation4], 128  }
  0x58   : > { %787 = vsyncadd (%p1136_p2), [#allocation4], 4294967168  ;;  %s1014_s8 = sand.u32 1, %s806_s13   ;;  %p1137_p8 = scmp.ne.s32.totalorder %s1126_s23, 0 }
  0x59   : > { %s524_s10 = sshll.u32 %s1014_s8, 5  ;;  %s202_s30 = scalar_lea.sflag [#allocation7], %s1014_s8 }
  0x5a   : > { %s205_s29 = scalar_lea.vmem [#allocation6], %s524_s10 }
  0x5b   : > { %789 = dma.done.wait (%p1137_p8), %s202_s30, 512  }
  0x5c   : > { %791 = vsyncadd (%p1137_p8), %s202_s30, 4294966784  ;;  %v829_v0 = vmov 0.0|0.0   ;;  %vm830_vm0 = vmmov 0   ;;  %v831_v1 = vmov 0.0   ;;  %v234_v2 = vld [vmem:[%s205_s29] sm:$0xff]  ;;  %v235_v3 = vld [vmem:[%s205_s29 + $0x8] sm:$0xff] }
  0x5d   : > { %551 = vmatprep.subr.bf16.mxu0 %v829_v0  ;;  %548 = vmatprep.mubr.msk.f32.mxu0 %vm830_vm0, %v831_v1  ;;  %v236_v4 = vld [vmem:[%s205_s29 + $0x10] sm:$0xff]  ;;  %v552_v5 = vpack.c.bf16 %v235_v3, %v234_v2  ;;  %v237_v6 = vld [vmem:[%s205_s29 + $0x18] sm:$0xff]  ;;  %vm238_vm1 = vcmask 261120   ;;  %v320_v9 = vmul.f32 %v234_v2, %v234_v2  ;;  %v321_v10 = vmul.f32 %v235_v3, %v235_v3  ;;  %s531_s21 = sshll.u32 %s814_s15, 7  ;;  %s225_s23 = scalar_lea.vmem [#allocation8], %s524_s10 }
  0x5e   : > { %v555_v7 = vpack.c.bf16 %v237_v6, %v236_v4  ;;  %v233_v8 = vld [vmem:[#allocation3] sm:$0xff]  ;;  %v322_v11 = vmul.f32 %v236_v4, %v236_v4  ;;  %v323_v13 = vmul.f32 %v237_v6, %v237_v6  ;;  %s371_s26 = sshll.u32 %s225_s23, 4  ;;  %s1032_s5 = scalar_lea.hbm %s1116_s2, %s531_s21  ;;  %s1034_s26 = int_to_ptr.vmem [resolvable:$true] %s371_s26 }
  0x5f   : > { %553 = vmatpush3.bf16.msra.mxu0 %v552_v5  ;;  %v324_v12 = vadd.f32 %v321_v10, %v320_v9  ;;  %s354_s20 = scalar_lea.sflag [#allocation5], %s1014_s8  ;;  %s704_s6 = scalar_lea.vmem %s1034_s26, 512 }
  0x60   : > { %554 = vmatprep.subr.bf16.mxu0 %v829_v0  ;;  %p705_p6 = scmp.ne.s32.totalorder %s1034_s26, %s704_s6  ;;  %p1138_p10 = scmp.ne.s32.totalorder %s1127_s24, 0 }
  0x61   : > { %v325_v14 = vadd.f32 %v324_v12, %v322_v11  ;;  %s832_s11 = smov [#allocation8]  }
  0x62   : > { %p706_p11 = pnand %p705_p6, %p1138_p10  ;;  %s708_s19 = sshll.u32 %s832_s11, 4  ;;  %s709_s19 = int_to_ptr.vmem [resolvable:$false] %s708_s19 }
  0x63   : > { %556 = vmatpush3.bf16.msra.mxu0 %v555_v7  ;;  %v326_v15 = vadd.f32 %v325_v14, %v323_v13  ;;  %s710_s27 = scalar_lea.vmem %s709_s19, 1024  ;;  %p711_p0 = scmp.lt.s32.totalorder %s1034_s26, %s709_s19 }
  0x64   : > { %p707_p13 = pneg %p706_p11  ;;  %p712_p9 = scmp.lt.s32.totalorder %s710_s27, %s704_s6 }
  0x65   : > { %v327_v16 = vrot.slane %v326_v15, 4 }
  0x66   : > { %549 = vmatmul.mubr.msk.f32.vlgmr.msra.gmra.mrb[0].mxu0 %vm238_vm1, %v233_v8  ;;  %p713_p3 = por %p712_p9, %p711_p0 }
  0x67   : > { %v328_v17 = vadd.f32 %v327_v16, %v326_v15 }
  0x68   : > { %p714_p7 = pnand %p713_p3, %p707_p13 }
  0x69   : > { %v329_v18 = vrot.slane %v328_v17, 2 }
  0x6b   : > { %v330_v19 = vadd.f32 %v329_v18, %v328_v17 }
  0x6d   : > { %v331_v20 = vrot.slane %v330_v19, 1 }
  0x6f   : > { %v332_v21 = vadd.f32 %v331_v20, %v330_v19 }
  0x71   : > { %v333_v22 = vmax.f32 %v332_v21, 1e-24 }
  0x73   : > { %644 = vrsqrt.f32 %v333_v22 }
  0x7d   : > { %v645_v23 = vpop.eup %644 }
  0x7e   : > { %335 = vst [vmem:[#allocation2] sm:$0x1] %v645_v23  ;;  %v336_v24 = vmul.f32 %v645_v23, %v234_v2  ;;  %v337_v25 = vmul.f32 %v645_v23, %v235_v3  ;;  %v338_v26 = vmul.f32 %v645_v23, %v236_v4  ;;  %v339_v27 = vmul.f32 %v645_v23, %v237_v6 }
  0x80   : > { %340 = vst [vmem:[%s225_s23] sm:$0xff] %v336_v24  ;;  %341 = vst [vmem:[%s225_s23 + $0x8] sm:$0xff] %v337_v25 }
  0x81   : > { %342 = vst [vmem:[%s225_s23 + $0x10] sm:$0xff] %v338_v26  ;;  %343 = vst [vmem:[%s225_s23 + $0x18] sm:$0xff] %v339_v27 }
  0x82   : > { %717 = shalt.err (!%p714_p7)
}
  0x83   : > { %s718_s7 = scalar_lea.hbm %s1032_s5, 512  ;;  %s722_s30 = scalar_lea.hbm %s1116_s2, 2048 }
  0x84   : > { %p719_p1 = scmp.ne.s32.totalorder %s1032_s5, %s718_s7  ;;  %p723_p12 = scmp.lt.u32.totalorder %s1032_s5, %s1116_s2 }
  0x85   : > { %p724_p2 = scmp.lt.u32.totalorder %s722_s30, %s718_s7  ;;  %p726_p6 = scmp.lt.u32.totalorder %s718_s7, %s1032_s5 }
  0x86   : > { %p720_p4 = pnand %p719_p1, %p1138_p10 }
  0x87   : > { %p725_p8 = por %p724_p2, %p723_p12 }
  0x88   : > { %p721_p5 = pneg %p720_p4 }
  0x89   : > { %p727_p11 = por %p726_p6, %p725_p8 }
  0x8b   : > { %p728_p13 = pnand %p727_p11, %p721_p5 }
  0x8d   : > { %731 = shalt.err (!%p728_p13)
}
  0x8e   : > { %s833_s18 = smov 128   ;;  %s834_s22 = smov 512   ;;  %v528_v28 = vld [vmem:[#allocation2] ss:$0 sm:$0xff] }
  0x8f   : > { %s835_s6 = smov 8   ;;  %s526_s11 = sshll.u32 %s1014_s8, 3 }
  0x90   : > { %563 = dma.vmem_to_hbm [thread:$0]  (%p1138_p10), %s1034_s26, 512, %s1032_s5, %s354_s20, %s833_s18, %s834_s22, %s835_s6  }
  0x91   : > { %s232_s19 = scalar_lea.vmem [#allocation9], %s526_s11  ;;  %s1066_s10 = scalar_lea.hbm %s1117_s3, %s531_s21 }
  0x92   : > { %s389_s27 = sshll.u32 %s232_s19, 4  ;;  %s359_s26 = scalar_lea.sflag [#allocation10], %s1014_s8  ;;  %s1068_s27 = int_to_ptr.vmem [resolvable:$true] %s389_s27 }
  0x93   : > { %s732_s5 = scalar_lea.vmem %s1068_s27, 128  ;;  %s836_s20 = smov [#allocation9]  }
  0x94   : > { %p733_p0 = scmp.ne.s32.totalorder %s1068_s27, %s732_s5  ;;  %s736_s30 = sshll.u32 %s836_s20, 4  ;;  %s737_s30 = int_to_ptr.vmem [resolvable:$false] %s736_s30 }
  0x95   : > { %s738_s15 = scalar_lea.vmem %s737_s30, 256  ;;  %p739_p7 = scmp.lt.s32.totalorder %s1068_s27, %s737_s30 }
  0x96   : > { %p734_p9 = pnand %p733_p0, %p1138_p10  ;;  %p740_p1 = scmp.lt.s32.totalorder %s738_s15, %s732_s5 }
  0x98   : > { %p735_p3 = pneg %p734_p9  ;;  %p741_p4 = por %p740_p1, %p739_p7 }
  0x9a   : > { %p742_p5 = pnand %p741_p4, %p735_p3 }
 0x139   : > { %v308_v29 = vpop.f32.mrb[0].mxu0 }
 0x13a   : > { %v351_v30 = vmul.f32 %v528_v28, %v308_v29  ;;  %v550_v31 = vpop.f32.mrb[1].mxu0 }
 0x13c   : > { %352 = vst [vmem:[%s232_s19] sm:$0xff] %v351_v30 }
 0x13d   : > { %745 = shalt.err (!%p742_p5)
}
 0x13e   : > { %s746_s8 = scalar_lea.hbm %s1066_s10, 128  ;;  %s750_s23 = scalar_lea.hbm %s1117_s3, 512 }
 0x13f   : > { %p747_p12 = scmp.ne.s32.totalorder %s1066_s10, %s746_s8  ;;  %p751_p6 = scmp.lt.u32.totalorder %s1066_s10, %s1117_s3 }
 0x140   : > { %p752_p11 = scmp.lt.u32.totalorder %s750_s23, %s746_s8  ;;  %p754_p0 = scmp.lt.u32.totalorder %s746_s8, %s1066_s10 }
 0x141   : > { %p748_p2 = pnand %p747_p12, %p1138_p10 }
 0x142   : > { %p753_p13 = por %p752_p11, %p751_p6 }
 0x143   : > { %p749_p8 = pneg %p748_p2 }
 0x144   : > { %p755_p9 = por %p754_p0, %p753_p13 }
 0x146   : > { %p756_p3 = pnand %p755_p9, %p749_p8 }
 0x148   : > { %759 = shalt.err (!%p756_p3)
}
 0x149   : > { %564 = dma.vmem_to_hbm [thread:$0]  (%p1138_p10), %s1068_s27, 128, %s1066_s10, %s359_s26  }
 0x14a PF: > { %p585_p7 = scmp.ge.s32.totalorder %s822_s17, 2  ;;  %s401_s6 = sand.u32 1, %s802_s12  }
 0x14b   : > { %p1139_p1 = scmp.ne.s32.totalorder %s1128_s25, 0  ;;  %s402_s11 = scalar_lea.sflag [#allocation5], %s401_s6 }
 0x14d   : > { %p576_p4 = pnand %p585_p7, %p1139_p1 }
 0x14f   : > { %793 = dma.done.wait (!%p576_p4), %s402_s11, 512  }
 0x150   : > { %795 = vsyncadd (!%p576_p4), %s402_s11, 4294966784  ;;  %s411_s19 = scalar_lea.sflag [#allocation10], %s401_s6 }
 0x151   : > { %797 = dma.done.wait (!%p576_p4), %s411_s19, 128  }
 0x152   : > { %799 = vsyncadd (!%p576_p4), %s411_s19, 4294967168  ;;  %s24_s17 = sadd.s32 1, %s822_s17   ;;  %s1140_s12 = smov %s806_s13 }
 0x153   : > { %p21_p5 = scmp.ge.s32.totalorder %s24_s17, 6   ;;  %s1141_s13 = smov %s810_s14 }
 0x154   : > { %s1142_s14 = smov %s975_s28  ;;  %s1143_s15 = smov %s818_s16 }
 0x155   : > { %s1144_s16 = smov %s1146_s4  ;;  %23 = sbr.rel (!%p21_p5) target bundleno = 9 (0x9), region = 100 }
 0x15c   :  { %416 = vsyncpa [#allocation4], 1 }
 0x15d   :  { %418 = vsyncpa [#allocation4 + $0x1], 1 }
 0x15e   :  { %419 = vsyncpa [#allocation7], 1 }
 0x15f   :  { %421 = vsyncpa [#allocation7 + $0x1], 1 }
 0x160   :  { %422 = vsyncpa [#allocation5], 1 }
 0x161   :  { %424 = vsyncpa [#allocation5 + $0x1], 1 }
 0x162   :  { %425 = vsyncpa [#allocation10], 1 }
 0x163   :  { %427 = vsyncpa [#allocation10 + $0x1], 1 }

</bundles_post_ra>
